<compile_context>
chip_gen: v6e
topology: v6e:2x2x1
jax: 0.10.0
libtpu: 0.0.40
codegen_flags: <defaults>
</compile_context>

<pallas_src>
import jax
import jax.numpy as jnp
from jax.experimental import pallas as pl
from jax.experimental.pallas import tpu as pltpu


def _round_up(x, m):
    return ((x + m - 1) // m) * m


# ----------------------------------------------------------------------------
# Fused kernel: all four GraphConvolution layers + activations, one call.
#   w_io_ref : (3, infeat,  outfeat)   [W1, W3a, W3b]
#   w_oi_ref : (5, outfeat, infeat)    [W2a, W2b, W4a, W4b, W4c]
#   bias_ref : (4, bias_pad)           rows = b1, b2, b3, b4 (lane-padded)
#   out_ref  : (N, f_pad)              [:, :outfeat] = gc3, [:, outfeat:outfeat+infeat] = gc4
# ----------------------------------------------------------------------------
def _fused_gcn_kernel(real_x_ref, fake_x_ref, real_adj_ref, fake_adj_ref,
                      w_io_ref, w_oi_ref, bias_ref, out_ref):
    outfeat = real_x_ref.shape[1]
    infeat = fake_x_ref.shape[1]

    real_x = real_x_ref[...]          # (N, outfeat)
    fake_x = fake_x_ref[...]          # (N, infeat)
    real_adj = real_adj_ref[...]      # (N, N)
    fake_adj = fake_adj_ref[...]      # (N, N)

    # Static slices of the stacked weight / bias slabs (no runtime indexing).
    w1 = w_io_ref[0]                  # (infeat, outfeat)
    w3a = w_io_ref[1]
    w3b = w_io_ref[2]
    w2a = w_oi_ref[0]                 # (outfeat, infeat)
    w2b = w_oi_ref[1]
    w4a = w_oi_ref[2]
    w4b = w_oi_ref[3]
    w4c = w_oi_ref[4]

    b1 = bias_ref[0:1, :outfeat]      # (1, outfeat)
    b2 = bias_ref[1:2, :infeat]       # (1, infeat)
    b3 = bias_ref[2:3, :outfeat]
    b4 = bias_ref[3:4, :infeat]

    def mm(a, b):
        return jnp.dot(a, b, preferred_element_type=jnp.float32)

    # gc1 = relu(real_adj @ (fake_x @ W1) + b1)                        (N, outfeat)
    gc1 = jnp.maximum(mm(real_adj, mm(fake_x, w1)) + b1, 0.0)

    # gc1_concat = [real_x | gc1]  (never materialized; W2 pre-split)
    # gc2 = relu(fake_adj @ (real_x @ W2a + gc1 @ W2b) + b2)           (N, infeat)
    sup2 = mm(real_x, w2a) + mm(gc1, w2b)
    gc2 = jnp.maximum(mm(fake_adj, sup2) + b2, 0.0)

    # gc2_concat = [fake_x | gc2]
    # gc3 = relu(real_adj @ (fake_x @ W3a + gc2 @ W3b) + b3)           (N, outfeat)
    sup3 = mm(fake_x, w3a) + mm(gc2, w3b)
    gc3 = jnp.maximum(mm(real_adj, sup3) + b3, 0.0)

    # gc3_concat = [real_x | gc1 | gc3]
    # gc4 = tanh(fake_adj @ (real_x @ W4a + gc1 @ W4b + gc3 @ W4c) + b4)  (N, infeat)
    sup4 = mm(real_x, w4a) + mm(gc1, w4b) + mm(gc3, w4c)
    gc4 = jnp.tanh(mm(fake_adj, sup4) + b4)

    # Two sliced stores into the lane-padded output slab; pad lanes are never
    # read by the wrapper, so they are left uninitialized (no zeros slab).
    out_ref[:, :outfeat] = gc3
    out_ref[:, outfeat:outfeat + infeat] = gc4


# ----------------------------------------------------------------------------
# One-time parameter packing (outside the per-step jit).
# ----------------------------------------------------------------------------
def pack_two_layers_gcn_params(params, infeat, outfeat):
    w1, b1 = params["gc1"]
    w2, b2 = params["gc2"]
    w3, b3 = params["gc3"]
    w4, b4 = params["gc4"]

    # Split concat-weights: concat(A, B) @ W == A @ W[:Fa] + B @ W[Fa:]
    w2a, w2b = w2[:outfeat], w2[outfeat:]                                   # [real_x | gc1]
    w3a, w3b = w3[:infeat], w3[infeat:]                                     # [fake_x | gc2]
    w4a, w4b, w4c = w4[:outfeat], w4[outfeat:2 * outfeat], w4[2 * outfeat:]  # [real_x|gc1|gc3]

    w_io = jnp.stack([w1, w3a, w3b], axis=0)            # (3, infeat,  outfeat)
    w_oi = jnp.stack([w2a, w2b, w4a, w4b, w4c], axis=0)  # (5, outfeat, infeat)

    bias_pad = _round_up(max(infeat, outfeat), 128)
    bias = jnp.zeros((4, bias_pad), jnp.float32)
    bias = bias.at[0, :outfeat].set(b1)
    bias = bias.at[1, :infeat].set(b2)
    bias = bias.at[2, :outfeat].set(b3)
    bias = bias.at[3, :infeat].set(b4)

    return {"w_io": w_io, "w_oi": w_oi, "bias": bias}


# ----------------------------------------------------------------------------
# twoLayersGCN.forward (takes pre-packed params)
# ----------------------------------------------------------------------------
@jax.jit
def two_layers_gcn_forward(packed, real_x, real_adj, fake_x, fake_adj):
    N, outfeat = real_x.shape
    infeat = fake_x.shape[1]

    w_io = packed["w_io"]
    w_oi = packed["w_oi"]
    bias = packed["bias"]

    f_pad = _round_up(outfeat + infeat, 128)   # lane-dense packed output width

    # VMEM footprint: two full-extent f32 adjs dominate; add small operands,
    # the packed output slab, and headroom.  Capped well below physical VMEM.
    operand_bytes = 4 * (2 * N * N
                         + N * (outfeat + infeat)
                         + N * f_pad
                         + w_io.size + w_oi.size + bias.size)
    vmem_limit = min(100 * 1024 * 1024, max(4 * 1024 * 1024, 2 * operand_bytes))

    flops = 2 * (N * infeat * outfeat + N * N * outfeat            # gc1
                 + 2 * N * outfeat * infeat + N * N * infeat        # gc2
                 + 2 * N * infeat * outfeat + N * N * outfeat       # gc3
                 + 3 * N * outfeat * infeat + N * N * infeat)       # gc4
    cost = pl.CostEstimate(flops=flops,
                           transcendentals=N * infeat,              # tanh
                           bytes_accessed=operand_bytes)

    vmem = pl.BlockSpec(memory_space=pltpu.MemorySpace.VMEM)
    packed_out = pl.pallas_call(
        _fused_gcn_kernel,
        out_shape=jax.ShapeDtypeStruct((N, f_pad), jnp.float32),
        in_specs=[vmem] * 7,
        out_specs=vmem,
        compiler_params=pltpu.CompilerParams(vmem_limit_bytes=int(vmem_limit)),
        cost_estimate=cost,
    )(real_x, fake_x, real_adj, fake_adj, w_io, w_oi, bias)

    gc3_output = packed_out[:, :outfeat]
    gc4_output = packed_out[:, outfeat:outfeat + infeat]
    return gc3_output, gc4_output


# ----------------------------------------------------------------------------
# Parameter init (deterministic; mirrors GraphConvolution.reset_parameters:
# uniform(-stdv, stdv) with stdv = 1/sqrt(fan_out))
# ----------------------------------------------------------------------------
def init_gcn_params(key, fin, fout):
    kw, kb = jax.random.split(key)
    stdv = 1.0 / jnp.sqrt(jnp.float32(fout))
    w = jax.random.uniform(kw, (fin, fout), jnp.float32, -stdv, stdv)
    b = jax.random.uniform(kb, (fout,), jnp.float32, -stdv, stdv)
    return w, b


def init_two_layers_gcn(key, infeat, outfeat):
    k1, k2, k3, k4 = jax.random.split(key, 4)
    return {
        "gc1": init_gcn_params(k1, infeat, outfeat),
        "gc2": init_gcn_params(k2, outfeat * 2, infeat),
        "gc3": init_gcn_params(k3, infeat * 2, outfeat),
        "gc4": init_gcn_params(k4, outfeat * 3, infeat),
    }


if __name__ == "__main__":
    # Small shapes consistent with the forward pass:
    #   real_x: (N, outfeat), fake_x: (N, infeat), adjs: (N, N)
    N = 8
    infeat = 32
    outfeat = 16

    key = jax.random.PRNGKey(0)
    kp, kx1, kx2, ka1, ka2 = jax.random.split(key, 5)

    params = init_two_layers_gcn(kp, infeat, outfeat)
    packed_params = pack_two_layers_gcn_params(params, infeat, outfeat)  # once, at init

    real_x = jax.random.normal(kx1, (N, outfeat), jnp.float32)
    fake_x = jax.random.normal(kx2, (N, infeat), jnp.float32)

    # Row-normalized random dense adjacency matrices.
    real_adj = jax.random.uniform(ka1, (N, N), jnp.float32)
    real_adj = real_adj / jnp.sum(real_adj, axis=1, keepdims=True)
    fake_adj = jax.random.uniform(ka2, (N, N), jnp.float32)
    fake_adj = fake_adj / jnp.sum(fake_adj, axis=1, keepdims=True)

    gc3_out, gc4_out = two_layers_gcn_forward(
        packed_params, real_x, real_adj, fake_x, fake_adj
    )
    jax.block_until_ready((gc3_out, gc4_out))

    # Reference check in plain JAX (same math, no Pallas, with real concats).
    def ref_layer(x, adj, w, b, act):
        out = adj @ (x @ w) + b
        return jnp.maximum(out, 0.0) if act == "relu" else jnp.tanh(out)

    r1 = ref_layer(fake_x, real_adj, *params["gc1"], "relu")
    c1 = jnp.concatenate((real_x, r1), axis=1)
    r2 = ref_layer(c1, fake_adj, *params["gc2"], "relu")
    c2 = jnp.concatenate((fake_x, r2), axis=1)
    r3 = ref_layer(c2, real_adj, *params["gc3"], "relu")
    c3 = jnp.concatenate((c1, r3), axis=1)
    r4 = ref_layer(c3, fake_adj, *params["gc4"], "tanh")

    assert gc3_out.shape == (N, outfeat) and gc4_out.shape == (N, infeat)
    assert jnp.allclose(gc3_out, r3, atol=1e-5, rtol=1e-5)
    assert jnp.allclose(gc4_out, r4, atol=1e-5, rtol=1e-5)

    print("KERNEL_OK")
</pallas_src>

<mosaic_0001>
module attributes {stable_mosaic.version = 11 : i64} {
  func.func @_fused_gcn_kernel(%arg0: memref<8x16xf32, #tpu.memory_space<vmem>>, %arg1: memref<8x32xf32, #tpu.memory_space<vmem>>, %arg2: memref<8x8xf32, #tpu.memory_space<vmem>>, %arg3: memref<8x8xf32, #tpu.memory_space<vmem>>, %arg4: memref<3x32x16xf32, #tpu.memory_space<vmem>>, %arg5: memref<5x16x32xf32, #tpu.memory_space<vmem>>, %arg6: memref<4x128xf32, #tpu.memory_space<vmem>>, %arg7: memref<8x128xf32, #tpu.memory_space<vmem>>) attributes {dimension_semantics = [], scalar_prefetch = 0 : i64, scratch_operands = 0 : i64, tpu.core_type = #tpu.core_type<tc>} {
    %c0 = arith.constant 0 : index
    %c0_0 = arith.constant 0 : index
    %0 = vector.load %arg0[%c0, %c0_0] : memref<8x16xf32, #tpu.memory_space<vmem>>, vector<8x16xf32>
    %c0_1 = arith.constant 0 : index
    %c0_2 = arith.constant 0 : index
    %1 = vector.load %arg1[%c0_1, %c0_2] : memref<8x32xf32, #tpu.memory_space<vmem>>, vector<8x32xf32>
    %c0_3 = arith.constant 0 : index
    %c0_4 = arith.constant 0 : index
    %2 = vector.load %arg2[%c0_3, %c0_4] : memref<8x8xf32, #tpu.memory_space<vmem>>, vector<8x8xf32>
    %c0_5 = arith.constant 0 : index
    %c0_6 = arith.constant 0 : index
    %3 = vector.load %arg3[%c0_5, %c0_6] : memref<8x8xf32, #tpu.memory_space<vmem>>, vector<8x8xf32>
    %c0_7 = arith.constant 0 : index
    %c0_8 = arith.constant 0 : index
    %c0_9 = arith.constant 0 : index
    %4 = vector.load %arg4[%c0_7, %c0_8, %c0_9] : memref<3x32x16xf32, #tpu.memory_space<vmem>>, vector<1x32x16xf32>
    %5 = vector.shape_cast %4 : vector<1x32x16xf32> to vector<32x16xf32>
    %c1 = arith.constant 1 : index
    %c0_10 = arith.constant 0 : index
    %c0_11 = arith.constant 0 : index
    %6 = vector.load %arg4[%c1, %c0_10, %c0_11] : memref<3x32x16xf32, #tpu.memory_space<vmem>>, vector<1x32x16xf32>
    %7 = vector.shape_cast %6 : vector<1x32x16xf32> to vector<32x16xf32>
    %c2 = arith.constant 2 : index
    %c0_12 = arith.constant 0 : index
    %c0_13 = arith.constant 0 : index
    %8 = vector.load %arg4[%c2, %c0_12, %c0_13] : memref<3x32x16xf32, #tpu.memory_space<vmem>>, vector<1x32x16xf32>
    %9 = vector.shape_cast %8 : vector<1x32x16xf32> to vector<32x16xf32>
    %c0_14 = arith.constant 0 : index
    %c0_15 = arith.constant 0 : index
    %c0_16 = arith.constant 0 : index
    %10 = vector.load %arg5[%c0_14, %c0_15, %c0_16] : memref<5x16x32xf32, #tpu.memory_space<vmem>>, vector<1x16x32xf32>
    %11 = vector.shape_cast %10 : vector<1x16x32xf32> to vector<16x32xf32>
    %c1_17 = arith.constant 1 : index
    %c0_18 = arith.constant 0 : index
    %c0_19 = arith.constant 0 : index
    %12 = vector.load %arg5[%c1_17, %c0_18, %c0_19] : memref<5x16x32xf32, #tpu.memory_space<vmem>>, vector<1x16x32xf32>
    %13 = vector.shape_cast %12 : vector<1x16x32xf32> to vector<16x32xf32>
    %c2_20 = arith.constant 2 : index
    %c0_21 = arith.constant 0 : index
    %c0_22 = arith.constant 0 : index
    %14 = vector.load %arg5[%c2_20, %c0_21, %c0_22] : memref<5x16x32xf32, #tpu.memory_space<vmem>>, vector<1x16x32xf32>
    %15 = vector.shape_cast %14 : vector<1x16x32xf32> to vector<16x32xf32>
    %c3 = arith.constant 3 : index
    %c0_23 = arith.constant 0 : index
    %c0_24 = arith.constant 0 : index
    %16 = vector.load %arg5[%c3, %c0_23, %c0_24] : memref<5x16x32xf32, #tpu.memory_space<vmem>>, vector<1x16x32xf32>
    %17 = vector.shape_cast %16 : vector<1x16x32xf32> to vector<16x32xf32>
    %c4 = arith.constant 4 : index
    %c0_25 = arith.constant 0 : index
    %c0_26 = arith.constant 0 : index
    %18 = vector.load %arg5[%c4, %c0_25, %c0_26] : memref<5x16x32xf32, #tpu.memory_space<vmem>>, vector<1x16x32xf32>
    %19 = vector.shape_cast %18 : vector<1x16x32xf32> to vector<16x32xf32>
    %c0_27 = arith.constant 0 : index
    %c0_28 = arith.constant 0 : index
    %20 = vector.load %arg6[%c0_27, %c0_28] : memref<4x128xf32, #tpu.memory_space<vmem>>, vector<1x16xf32>
    %c1_29 = arith.constant 1 : index
    %c0_30 = arith.constant 0 : index
    %21 = vector.load %arg6[%c1_29, %c0_30] : memref<4x128xf32, #tpu.memory_space<vmem>>, vector<1x32xf32>
    %c2_31 = arith.constant 2 : index
    %c0_32 = arith.constant 0 : index
    %22 = vector.load %arg6[%c2_31, %c0_32] : memref<4x128xf32, #tpu.memory_space<vmem>>, vector<1x16xf32>
    %c3_33 = arith.constant 3 : index
    %c0_34 = arith.constant 0 : index
    %23 = vector.load %arg6[%c3_33, %c0_34] : memref<4x128xf32, #tpu.memory_space<vmem>>, vector<1x32xf32>
    %cst = arith.constant dense<0.000000e+00> : vector<8x16xf32>
    %24 = tpu.matmul %1, %5, %cst {dimension_numbers = #tpu.dot_dimension_numbers<[1], [0], [0], [1], [0, 0, 1, 1], [], []>} : vector<8x32xf32>, vector<32x16xf32>, vector<8x16xf32> -> vector<8x16xf32>
    %cst_35 = arith.constant dense<0.000000e+00> : vector<8x16xf32>
    %25 = tpu.matmul %2, %24, %cst_35 {dimension_numbers = #tpu.dot_dimension_numbers<[1], [0], [0], [1], [0, 0, 1, 1], [], []>} : vector<8x8xf32>, vector<8x16xf32>, vector<8x16xf32> -> vector<8x16xf32>
    %26 = vector.broadcast %20 : vector<1x16xf32> to vector<8x16xf32>
    %27 = arith.addf %25, %26 : vector<8x16xf32>
    %cst_36 = arith.constant 0.000000e+00 : f32
    %28 = vector.broadcast %cst_36 : f32 to vector<8x16xf32>
    %29 = arith.maximumf %27, %28 : vector<8x16xf32>
    %cst_37 = arith.constant dense<0.000000e+00> : vector<8x32xf32>
    %30 = tpu.matmul %0, %11, %cst_37 {dimension_numbers = #tpu.dot_dimension_numbers<[1], [0], [0], [1], [0, 0, 1, 1], [], []>} : vector<8x16xf32>, vector<16x32xf32>, vector<8x32xf32> -> vector<8x32xf32>
    %cst_38 = arith.constant dense<0.000000e+00> : vector<8x32xf32>
    %31 = tpu.matmul %29, %13, %cst_38 {dimension_numbers = #tpu.dot_dimension_numbers<[1], [0], [0], [1], [0, 0, 1, 1], [], []>} : vector<8x16xf32>, vector<16x32xf32>, vector<8x32xf32> -> vector<8x32xf32>
    %32 = arith.addf %30, %31 : vector<8x32xf32>
    %cst_39 = arith.constant dense<0.000000e+00> : vector<8x32xf32>
    %33 = tpu.matmul %3, %32, %cst_39 {dimension_numbers = #tpu.dot_dimension_numbers<[1], [0], [0], [1], [0, 0, 1, 1], [], []>} : vector<8x8xf32>, vector<8x32xf32>, vector<8x32xf32> -> vector<8x32xf32>
    %34 = vector.broadcast %21 : vector<1x32xf32> to vector<8x32xf32>
    %35 = arith.addf %33, %34 : vector<8x32xf32>
    %cst_40 = arith.constant 0.000000e+00 : f32
    %36 = vector.broadcast %cst_40 : f32 to vector<8x32xf32>
    %37 = arith.maximumf %35, %36 : vector<8x32xf32>
    %cst_41 = arith.constant dense<0.000000e+00> : vector<8x16xf32>
    %38 = tpu.matmul %1, %7, %cst_41 {dimension_numbers = #tpu.dot_dimension_numbers<[1], [0], [0], [1], [0, 0, 1, 1], [], []>} : vector<8x32xf32>, vector<32x16xf32>, vector<8x16xf32> -> vector<8x16xf32>
    %cst_42 = arith.constant dense<0.000000e+00> : vector<8x16xf32>
    %39 = tpu.matmul %37, %9, %cst_42 {dimension_numbers = #tpu.dot_dimension_numbers<[1], [0], [0], [1], [0, 0, 1, 1], [], []>} : vector<8x32xf32>, vector<32x16xf32>, vector<8x16xf32> -> vector<8x16xf32>
    %40 = arith.addf %38, %39 : vector<8x16xf32>
    %cst_43 = arith.constant dense<0.000000e+00> : vector<8x16xf32>
    %41 = tpu.matmul %2, %40, %cst_43 {dimension_numbers = #tpu.dot_dimension_numbers<[1], [0], [0], [1], [0, 0, 1, 1], [], []>} : vector<8x8xf32>, vector<8x16xf32>, vector<8x16xf32> -> vector<8x16xf32>
    %42 = vector.broadcast %22 : vector<1x16xf32> to vector<8x16xf32>
    %43 = arith.addf %41, %42 : vector<8x16xf32>
    %cst_44 = arith.constant 0.000000e+00 : f32
    %44 = vector.broadcast %cst_44 : f32 to vector<8x16xf32>
    %45 = arith.maximumf %43, %44 : vector<8x16xf32>
    %cst_45 = arith.constant dense<0.000000e+00> : vector<8x32xf32>
    %46 = tpu.matmul %0, %15, %cst_45 {dimension_numbers = #tpu.dot_dimension_numbers<[1], [0], [0], [1], [0, 0, 1, 1], [], []>} : vector<8x16xf32>, vector<16x32xf32>, vector<8x32xf32> -> vector<8x32xf32>
    %cst_46 = arith.constant dense<0.000000e+00> : vector<8x32xf32>
    %47 = tpu.matmul %29, %17, %cst_46 {dimension_numbers = #tpu.dot_dimension_numbers<[1], [0], [0], [1], [0, 0, 1, 1], [], []>} : vector<8x16xf32>, vector<16x32xf32>, vector<8x32xf32> -> vector<8x32xf32>
    %48 = arith.addf %46, %47 : vector<8x32xf32>
    %cst_47 = arith.constant dense<0.000000e+00> : vector<8x32xf32>
    %49 = tpu.matmul %45, %19, %cst_47 {dimension_numbers = #tpu.dot_dimension_numbers<[1], [0], [0], [1], [0, 0, 1, 1], [], []>} : vector<8x16xf32>, vector<16x32xf32>, vector<8x32xf32> -> vector<8x32xf32>
    %50 = arith.addf %48, %49 : vector<8x32xf32>
    %cst_48 = arith.constant dense<0.000000e+00> : vector<8x32xf32>
    %51 = tpu.matmul %3, %50, %cst_48 {dimension_numbers = #tpu.dot_dimension_numbers<[1], [0], [0], [1], [0, 0, 1, 1], [], []>} : vector<8x8xf32>, vector<8x32xf32>, vector<8x32xf32> -> vector<8x32xf32>
    %52 = vector.broadcast %23 : vector<1x32xf32> to vector<8x32xf32>
    %53 = arith.addf %51, %52 : vector<8x32xf32>
    %54 = math.tanh %53 : vector<8x32xf32>
    %c0_49 = arith.constant 0 : index
    %c0_50 = arith.constant 0 : index
    %55 = vector.load %arg7[%c0_49, %c0_50] : memref<8x128xf32, #tpu.memory_space<vmem>>, vector<8x16xf32>
    tpu.vector_store %arg7[%c0_49, %c0_50], %45 {strides = array<i32>} : memref<8x128xf32, #tpu.memory_space<vmem>>, vector<8x16xf32>,
    %c0_51 = arith.constant 0 : index
    %c16 = arith.constant 16 : index
    %56 = vector.load %arg7[%c0_51, %c16] : memref<8x128xf32, #tpu.memory_space<vmem>>, vector<8x32xf32>
    tpu.vector_store %arg7[%c0_51, %c16], %54 {strides = array<i32>} : memref<8x128xf32, #tpu.memory_space<vmem>>, vector<8x32xf32>,
    return
  }
}

</mosaic_0001>

<bundles_post_ra>
// kernel: two_layers_gcn_forward.1
= control target key start
LH: loop header
LB: loop body
LE: loop exit
PB: predicated region body
PF: predicated region fallthrough
CT: control target
= control target key end

     0   :  { %v1121_v0 = vmov 0.0   ;;  %vm1122_vm0 = vmmov 0   ;;  %vm62_vm1 = vcmask 261120   ;;  %vm140_vm2 = vcmask 64512   ;;  %s1123_s30 = smov 16   ;;  %s1339_s4 = inlined_call_operand.vmem [shape: f32[3,32,16], index: 4, kind: input, shape index: {}]   ;;  %s1340_s1 = inlined_call_operand.vmem [shape: f32[8,32], index: 1, kind: input, shape index: {}]   ;;  %s1341_s2 = inlined_call_operand.vmem [shape: f32[8,8], index: 2, kind: input, shape index: {}]   ;;  %s1342_s5 = inlined_call_operand.vmem [shape: f32[5,16,32], index: 5, kind: input, shape index: {}]   ;;  %s1343_s6 = inlined_call_operand.vmem [shape: f32[4,128], index: 6, kind: input, shape index: {}]   ;;  %s1344_s0 = inlined_call_operand.vmem [shape: f32[8,16], index: 0, kind: input, shape index: {}]   ;;  %s1345_s3 = inlined_call_operand.vmem [shape: f32[8,8], index: 3, kind: input, shape index: {}]   ;;  %s1346_s7 = inlined_call_operand.vmem [shape: f32[8,128], index: 7, kind: output, shape index: {}]  }
   0x1   :  { %1028 = vmatprep.subr.mxu0 %v1121_v0  ;;  %v33_v1 = vld [vmem:[%s1339_s4 + $0x18] sm:$0xff]  ;;  %v32_v2 = vld [vmem:[%s1339_s4 + $0x10] sm:$0xff]  ;;  %1036 = vmatprep.mubr.msk.f32.mxu0 %vm1122_vm0, %v1121_v0  ;;  %v31_v3 = vld [vmem:[%s1339_s4 + $0x8] sm:$0xff]  ;;  %vm215_vm3 = vcmask 130048   ;;  %vm952_vm4 = vcmask 392320  }
   0x2   :  { %1029 = vmatpush3.msra.mxu0 %v33_v1  ;;  %1039 = vmatprep.subr.mxu1 %v1121_v0  ;;  %v30_v4 = vld [vmem:[%s1339_s4] sm:$0xff]  ;;  %v967_v9 = vld [vmem:[%s1342_s5 + $0x18] sm:$0xff]  ;;  %v966_v10 = vld [vmem:[%s1342_s5 + $0x10] sm:$0xff] }
   0x3   :  { %1030 = vmatprep.subr.mxu0 %v1121_v0  ;;  %1041 = vmatprep.mubr.msk.f32.mxu1 %vm1122_vm0, %v1121_v0  ;;  %v1187_v5 = vld [vmem:[%s1340_s1] sm:$0xff]  ;;  %v45_v16 = vld [vmem:[%s1342_s5 + $0x8] sm:$0xff]  ;;  %v965_v19 = vld [vmem:[%s1339_s4 + $0x58] sm:$0xff] }
   0x4   :  { %1031 = vmatpush3.msra.mxu0 %v32_v2  ;;  %v1198_v6 = vld [vmem:[%s1341_s2] sm:$0xff]  ;;  %v961_v26 = vld [vmem:[%s1339_s4 + $0x38] sm:$0xff]  ;;  %v960_v27 = vld [vmem:[%s1339_s4 + $0x30] sm:$0xff] }
   0x5   :  { %1032 = vmatprep.subr.mxu0 %v1121_v0  ;;  %v975_v11 = vld [vmem:[%s1343_s6] ss:$0 sm:$0xff]  ;;  %v959_v28 = vld [vmem:[%s1339_s4 + $0x28] sm:$0xff]  ;;  %v971_v30 = vld [vmem:[%s1342_s5 + $0x38] sm:$0xff] }
   0x6   :  { %1033 = vmatpush3.msra.mxu0 %v31_v3  ;;  %v44_v17 = vld [vmem:[%s1342_s5] sm:$0xff]  ;;  %v970_v31 = vld [vmem:[%s1342_s5 + $0x30] sm:$0xff]  ;;  %v963_v33 = vld [vmem:[%s1339_s4 + $0x48] sm:$0xff] }
   0x7   :  { %1034 = vmatprep.subr.mxu0 %v1121_v0  ;;  %v1228_v18 = vld [vmem:[%s1344_s0] sm:$0xff]  ;;  %v964_v32 = vld [vmem:[%s1339_s4 + $0x50] sm:$0xff]  ;;  %v969_v47 = vld [vmem:[%s1342_s5 + $0x28] sm:$0xff] }
   0x8   :  { %1035 = vmatpush3.msra.mxu0 %v30_v4  ;;  %v1243_v24 = vld [vmem:[%s1345_s3] sm:$0xff]  ;;  %v973_v49 = vld [vmem:[%s1342_s5 + $0x48] sm:$0xff] }
   0x9   :  { %1037 = vmatmul.mubr.msk.f32.vlgmr.msra.gmra.mxu0 %vm62_vm1, %v1187_v5  ;;  %1058 = vmatprep.subr.mxu0 %v1121_v0  ;;  %v958_v29 = vld [vmem:[%s1339_s4 + $0x20] sm:$0xff] }
   0xa   :  { %1060 = vmatprep.mubr.msk.f32.mxu0 %vm1122_vm0, %v1121_v0  ;;  %v962_v34 = vld [vmem:[%s1339_s4 + $0x40] sm:$0xff] }
   0xb   :  { %v979_v35 = vld [vmem:[%s1343_s6 + $0x1] ss:$0 sm:$0xff]  ;;  %v983_v51 = vld [vmem:[%s1343_s6 + $0x2] ss:$0 sm:$0xff]  ;;  %v988_v62 = vld [vmem:[%s1343_s6 + $0x3] ss:$0 sm:$0xff] }
   0xc   :  { %v968_v48 = vld [vmem:[%s1342_s5 + $0x20] sm:$0xff] }
   0xd   :  { %v972_v50 = vld [vmem:[%s1342_s5 + $0x40] sm:$0xff] }
  0xc9   :  { %v132_v7 = vpop.f32.mrf.mxu0 }
  0xca   :  { %1040 = vmatpush3.msra.mxu1 %v132_v7 }
  0xcb   :  { %v1038_v8 = vpop.f32.mrf.mxu0  ;;  %1042 = vmatmul.mubr.msk.f32.vlgmr.msra.gmra.mxu1 %vm140_vm2, %v1198_v6  ;;  %1044 = vmatprep.subr.mxu1 %v1121_v0 }
  0xcc   :  { %1048 = vmatprep.mubr.msk.f32.mxu1 %vm1122_vm0, %v1121_v0  ;;  %1045 = vmatpush3.msra.mxu1 %v967_v9 }
  0xcd   :  { %1046 = vmatprep.subr.mxu1 %v1121_v0 }
  0xce   :  { %1047 = vmatpush3.msra.mxu1 %v966_v10 }
  0xcf   :  { %1051 = vmatprep.subr.mxu1 %v1121_v0 }
 0x18b   :  { %v210_v12 = vpop.f32.mrf.mxu1 }
 0x18c   :  { %v211_v13 = vadd.f32 %v975_v11, %v210_v12 }
 0x18d   :  { %v1043_v14 = vpop.f32.mrf.mxu1 }
 0x18e   :  { %v214_v15 = vmax.f32 %v211_v13, 0.0 }
 0x190   :  { %1049 = vmatmul.mubr.msk.f32.vlgmr.msra.gmra.mxu1 %vm215_vm3, %v214_v15 }
 0x191   :  { %1052 = vmatpush3.msra.mxu1 %v45_v16  ;;  %1055 = vmatprep.mubr.msk.f32.mxu1 %vm1122_vm0, %v1121_v0 }
 0x192   :  { %1053 = vmatprep.subr.mxu1 %v1121_v0 }
 0x193   :  { %1054 = vmatpush3.msra.mxu1 %v44_v17 }
 0x194   :  { %1056 = vmatmul.mubr.msk.f32.vlgmr.msra.gmra.mxu1 %vm215_vm3, %v1228_v18  ;;  %1063 = vmatprep.subr.mxu1 %v1121_v0 }
 0x195   :  { %1071 = vmatprep.mubr.msk.f32.mxu1 %vm1122_vm0, %v1121_v0  ;;  %1064 = vmatpush3.msra.mxu1 %v965_v19 }
 0x196   :  { %1065 = vmatprep.subr.mxu1 %v1121_v0 }
 0x197   :  { %1066 = vmatpush3.msra.mxu1 %v964_v32 }
 0x198   :  { %1067 = vmatprep.subr.mxu1 %v1121_v0 }
 0x199   :  { %1068 = vmatpush3.msra.mxu1 %v963_v33 }
 0x19a   :  { %1069 = vmatprep.subr.mxu1 %v1121_v0 }
 0x19b   :  { %1070 = vmatpush3.msra.mxu1 %v962_v34 }
 0x19c   :  { %1085 = vmatprep.subr.mxu1 %v1121_v0 }
 0x250   :  { %v285_v20 = vpop.f32.mrf.mxu1 }
 0x252   :  { %v1050_v21 = vpop.f32.mrf.mxu1 }
 0x254   :  { %v358_v22 = vpop.f32.mrf.mxu1 }
 0x255   :  { %v359_v23 = vadd.f32 %v358_v22, %v285_v20 }
 0x256   :  { %v1057_v25 = vpop.f32.mrf.mxu1 }
 0x257   :  { %1059 = vmatpush3.msra.mxu0 %v359_v23 }
 0x258   :  { %1061 = vmatmul.mubr.msk.f32.vlgmr.msra.gmra.mxu0 %vm140_vm2, %v1243_v24  ;;  %1074 = vmatprep.subr.mxu0 %v1121_v0 }
 0x259   :  { %1075 = vmatpush3.msra.mxu0 %v961_v26  ;;  %1082 = vmatprep.mubr.msk.f32.mxu0 %vm1122_vm0, %v1121_v0 }
 0x25a   :  { %1076 = vmatprep.subr.mxu0 %v1121_v0 }
 0x25b   :  { %1077 = vmatpush3.msra.mxu0 %v960_v27 }
 0x25c   :  { %1078 = vmatprep.subr.mxu0 %v1121_v0 }
 0x25d   :  { %1079 = vmatpush3.msra.mxu0 %v959_v28 }
 0x25e   :  { %1080 = vmatprep.subr.mxu0 %v1121_v0 }
 0x25f   :  { %1081 = vmatpush3.msra.mxu0 %v958_v29 }
 0x260   :  { %1083 = vmatmul.mubr.msk.f32.vlgmr.msra.gmra.mxu0 %vm62_vm1, %v1187_v5  ;;  %1090 = vmatprep.subr.mxu0 %v1121_v0 }
 0x261   :  { %1091 = vmatpush3.msra.mxu0 %v971_v30  ;;  %1094 = vmatprep.mubr.msk.f32.mxu0 %vm1122_vm0, %v1121_v0 }
 0x262   :  { %1092 = vmatprep.subr.mxu0 %v1121_v0 }
 0x263   :  { %1093 = vmatpush3.msra.mxu0 %v970_v31 }
 0x264   :  { %1095 = vmatmul.mubr.msk.f32.vlgmr.msra.gmra.mxu0 %vm215_vm3, %v214_v15  ;;  %1104 = vmatprep.subr.mxu0 %v1121_v0 }
 0x265   :  { %1108 = vmatprep.mubr.msk.f32.mxu0 %vm1122_vm0, %v1121_v0  ;;  %1105 = vmatpush3.msra.mxu0 %v973_v49 }
 0x266   :  { %1106 = vmatprep.subr.mxu0 %v1121_v0 }
 0x267   :  { %1107 = vmatpush3.msra.mxu0 %v972_v50 }
 0x318   :  { %v435_v36 = vpop.f32.mrf.mxu0 }
 0x319   :  { %v436_v37 = vadd.f32 %v979_v35, %v435_v36 }
 0x31a   :  { %v1062_v38 = vpop.f32.mrf.mxu0 }
 0x31b   :  { %v439_v39 = vmax.f32 %v436_v37, 0.0 }
 0x31d   :  { %1072 = vmatmul.mubr.msk.f32.vlgmr.msra.gmra.mxu1 %vm62_vm1, %v439_v39 }
 0x31e   :  { %1087 = vmatprep.mubr.msk.f32.mxu1 %vm1122_vm0, %v1121_v0 }
 0x320   :  { %v579_v40 = vpop.f32.mrf.mxu0 }
 0x322   :  { %v1084_v41 = vpop.f32.mrf.mxu0 }
 0x324   :  { %v724_v42 = vpop.f32.mrf.mxu0 }
 0x326   :  { %v1096_v43 = vpop.f32.mrf.mxu0 }
 0x3dd   :  { %v509_v44 = vpop.f32.mrf.mxu1 }
 0x3de   :  { %v580_v45 = vadd.f32 %v579_v40, %v509_v44 }
 0x3df   :  { %v1073_v46 = vpop.f32.mrf.mxu1 }
 0x3e0   :  { %1086 = vmatpush3.msra.mxu1 %v580_v45 }
 0x3e1   :  { %1088 = vmatmul.mubr.msk.f32.vlgmr.msra.gmra.mxu1 %vm140_vm2, %v1198_v6  ;;  %1097 = vmatprep.subr.mxu1 %v1121_v0 }
 0x3e2   :  { %1098 = vmatpush3.msra.mxu1 %v969_v47  ;;  %1101 = vmatprep.mubr.msk.f32.mxu1 %vm1122_vm0, %v1121_v0 }
 0x3e3   :  { %1099 = vmatprep.subr.mxu1 %v1121_v0 }
 0x3e4   :  { %1100 = vmatpush3.msra.mxu1 %v968_v48 }
 0x3e5   :  { %1102 = vmatmul.mubr.msk.f32.vlgmr.msra.gmra.mxu1 %vm215_vm3, %v1228_v18  ;;  %1111 = vmatprep.subr.mxu1 %v1121_v0 }
 0x3e6   :  { %1113 = vmatprep.mubr.msk.f32.mxu1 %vm1122_vm0, %v1121_v0 }
 0x4a1   :  { %v653_v52 = vpop.f32.mrf.mxu1 }
 0x4a2   :  { %v654_v53 = vadd.f32 %v983_v51, %v653_v52 }
 0x4a3   :  { %v1089_v54 = vpop.f32.mrf.mxu1 }
 0x4a4   :  { %v657_v55 = vmax.f32 %v654_v53, 0.0 }
 0x4a5   :  { %v794_v56 = vpop.f32.mrf.mxu1 }
 0x4a6   :  { %947 = vst.msk [vmem:[%s1346_s7] sm:$0xff] %vm215_vm3, %v657_v55  ;;  %1109 = vmatmul.mubr.msk.f32.vlgmr.msra.gmra.mxu0 %vm215_vm3, %v657_v55  ;;  %v795_v58 = vadd.f32 %v794_v56, %v724_v42 }
 0x4a7   :  { %v1103_v57 = vpop.f32.mrf.mxu1 }
 0x566   :  { %v867_v59 = vpop.f32.mrf.mxu0 }
 0x567   :  { %v871_v60 = vadd.f32 %v867_v59, %v795_v58 }
 0x568   :  { %v1110_v61 = vpop.f32.mrf.mxu0 }
 0x569   :  { %1112 = vmatpush3.msra.mxu1 %v871_v60 }
 0x56a   :  { %1114 = vmatmul.mubr.msk.f32.vlgmr.msra.gmra.mxu1 %vm140_vm2, %v1243_v24 }
 0x62a   :  { %v942_v63 = vpop.f32.mrf.mxu1 }
 0x62b   :  { %v943_v0 = vadd.f32 %v988_v62, %v942_v63 }
 0x62c   :  { %v1115_v1 = vpop.f32.mrf.mxu1 }
 0x62d   :  { %1119 = vtanh.f32 %v943_v0 }
 0x63a   :  { %v1120_v2 = vpop.eup %1119 }
 0x63b   :  { %949 = vrot.lane.b32.xlu0 %v1120_v2, %s1123_s30 }
 0x6ad   :  { %v950_v3 = vpop.permute.xlu0 %949 }
 0x6ae   :  { %953 = vst.msk [vmem:[%s1346_s7] sm:$0xff] %vm952_vm4, %v950_v3 }

</bundles_post_ra>
